<compile_context>
chip_gen: v7x
topology: tpu7x:2x2x1
jax: 0.10.0
libtpu: 0.0.40
codegen_flags: <defaults>
</compile_context>

<pallas_src>
import functools

import jax
import jax.numpy as jnp
from jax.experimental import pallas as pl
from jax.experimental.pallas import tpu as pltpu


def _euler_kernel(h_ref, xp_ref, w_in_ref, b_in_ref, w_hid_ref, b_hid_ref,
                  w_out_ref, b_out_ref, o_ref, *, input_size,
                  num_hidden_layers):
    # Feature-major layout: lane axis = batch tile, sublane axis = features.
    h = h_ref[0]                          # scalar step size (SMEM)
    xp = xp_ref[...]                      # [K_in, TB]  (K_in = in + n_param)
    w_in = w_in_ref[...]                  # [H, K_in]   (already transposed)
    k_in = xp.shape[0]

    # Input layer: f^T = W_in^T @ xp^T + b_in^T.  K_in is tiny (<= 8), so do a
    # VPU broadcast-multiply-accumulate instead of a near-empty MXU matmul.
    f = w_in[:, 0:1] * xp[0:1, :]                      # [H,1]*[1,TB] -> [H,TB]
    for k in range(1, k_in):
        f = f + w_in[:, k:k + 1] * xp[k:k + 1, :]
    f = f + b_in_ref[...]                              # [H, 1] broadcast

    # Hidden layers: f^T = W_l^T @ relu(f^T) + b_l^T  (MXU, K = H).
    for l in range(num_hidden_layers - 1):
        f = jnp.dot(w_hid_ref[l], jnp.maximum(f, 0.0),
                    preferred_element_type=jnp.float32) + b_hid_ref[l]

    # Output layer: f^T = W_out^T @ relu(f^T) + b_out^T   -> [input_size, TB]
    f = jnp.dot(w_out_ref[...], jnp.maximum(f, 0.0),
                preferred_element_type=jnp.float32) + b_out_ref[...]

    # Explicit Euler step (re-read x^T from the resident VMEM block; lane-dense
    # unmasked store of the [input_size, TB] result).
    o_ref[...] = (xp_ref[0:input_size, :] + h * f).astype(o_ref.dtype)


def euler_n_forward(x, p, params, *, h=1.0, num_hidden_layers=2, tb=None):
    """Pallas wrapper. x: [B, input_size], p: [B, num_param] -> [B, input_size]."""
    w_in, b_in, w_hid, b_hid, w_out, b_out = params
    B, input_size = x.shape
    _, num_param = p.shape
    hidden_size = w_in.shape[1]
    n_hid_stacked = w_hid.shape[0]
    k_in = input_size + num_param
    out_dtype = x.dtype

    # Pack + transpose activations: one [K_in, B] feature-major array.
    xp_t = jnp.concatenate([x, p], axis=1).T.astype(jnp.float32)

    # Transposed weights / column biases (compute in f32).
    w_in_t = jnp.asarray(w_in, jnp.float32).T                    # [H, K_in]
    b_in_t = jnp.asarray(b_in, jnp.float32).reshape(-1, 1)       # [H, 1]
    w_hid_t = jnp.swapaxes(jnp.asarray(w_hid, jnp.float32), 1, 2)  # [L-1,H,H]
    b_hid_t = jnp.asarray(b_hid, jnp.float32).reshape(n_hid_stacked,
                                                      hidden_size, 1)
    w_out_t = jnp.asarray(w_out, jnp.float32).T                  # [in, H]
    b_out_t = jnp.asarray(b_out, jnp.float32).reshape(-1, 1)     # [in, 1]

    # Batch tile: multiple of 128 lanes; prefer >= 2 grid steps (v7x has two
    # TensorCores and the batch axis is marked "parallel").
    b_128 = -(-B // 128) * 128
    if tb is None:
        tb = min(2048, b_128)
        if b_128 // tb < 2 and tb > 128:
            tb = max(128, ((tb // 2) // 128) * 128)
    tb = max(128, (tb // 128) * 128)
    tb = min(tb, b_128)
    b_pad = -(-b_128 // tb) * tb
    if b_pad != B:
        xp_t = jnp.pad(xp_t, ((0, 0), (0, b_pad - B)))

    grid = (b_pad // tb,)

    kernel = functools.partial(_euler_kernel, input_size=input_size,
                               num_hidden_layers=num_hidden_layers)

    flops = 2 * b_pad * (k_in * hidden_size
                         + (num_hidden_layers - 1) * hidden_size * hidden_size
                         + hidden_size * input_size)
    bytes_accessed = 4 * (b_pad * (k_in + input_size)
                          + w_in.size + b_in.size + w_hid.size + b_hid.size
                          + w_out.size + b_out.size)

    out_t = pl.pallas_call(
        kernel,
        out_shape=jax.ShapeDtypeStruct((input_size, b_pad), out_dtype),
        grid=grid,
        in_specs=[
            # step size h: scalar in SMEM (no recompile per h value)
            pl.BlockSpec(memory_space=pltpu.MemorySpace.SMEM),
            # packed activations x^T|p^T: tiled over the batch (lane) axis
            pl.BlockSpec((k_in, tb), lambda i: (0, i)),
            # weights / biases: whole arrays, constant index_map -> resident
            pl.BlockSpec((hidden_size, k_in), lambda i: (0, 0)),
            pl.BlockSpec((hidden_size, 1), lambda i: (0, 0)),
            pl.BlockSpec((n_hid_stacked, hidden_size, hidden_size),
                         lambda i: (0, 0, 0)),
            pl.BlockSpec((n_hid_stacked, hidden_size, 1),
                         lambda i: (0, 0, 0)),
            pl.BlockSpec((input_size, hidden_size), lambda i: (0, 0)),
            pl.BlockSpec((input_size, 1), lambda i: (0, 0)),
        ],
        out_specs=pl.BlockSpec((input_size, tb), lambda i: (0, i)),
        compiler_params=pltpu.CompilerParams(
            dimension_semantics=("parallel",)),
        cost_estimate=pl.CostEstimate(flops=flops, transcendentals=0,
                                      bytes_accessed=bytes_accessed),
    )(jnp.asarray([h], jnp.float32), xp_t,
      w_in_t, b_in_t, w_hid_t, b_hid_t, w_out_t, b_out_t)

    return out_t[:, :B].T


def init_params(key, input_size=2, num_param=1, hidden_size=20,
                num_hidden_layers=2):
    """Deterministic synthetic parameters (PyTorch-like uniform fan-in init).

    Weights stored [in_features, out_features] (transposed vs PyTorch) so the
    batch-major reference computes y = x @ W + b directly.
    """
    def linear(k, fan_in, fan_out):
        k1, k2 = jax.random.split(k)
        bound = 1.0 / jnp.sqrt(fan_in)
        w = jax.random.uniform(k1, (fan_in, fan_out), jnp.float32, -bound, bound)
        b = jax.random.uniform(k2, (1, fan_out), jnp.float32, -bound, bound)
        return w, b

    keys = jax.random.split(key, num_hidden_layers + 1)
    w_in, b_in = linear(keys[0], input_size + num_param, hidden_size)

    if num_hidden_layers >= 2:
        pairs = [linear(keys[1 + l], hidden_size, hidden_size)
                 for l in range(num_hidden_layers - 1)]
        w_hid = jnp.stack([w for w, _ in pairs])     # [L-1, H, H]
        b_hid = jnp.stack([b for _, b in pairs])     # [L-1, 1, H]
    else:
        # placeholder (never read when num_hidden_layers == 1)
        w_hid = jnp.zeros((1, hidden_size, hidden_size), jnp.float32)
        b_hid = jnp.zeros((1, 1, hidden_size), jnp.float32)

    w_out, b_out = linear(keys[-1], hidden_size, input_size)
    return w_in, b_in, w_hid, b_hid, w_out, b_out


def euler_n_reference(x, p, params, *, h=1.0, num_hidden_layers=2):
    """Pure-JAX reference for correctness checking."""
    w_in, b_in, w_hid, b_hid, w_out, b_out = params
    i = jnp.concatenate([x, p], axis=1)
    f = i @ w_in + b_in
    for l in range(num_hidden_layers - 1):
        f = jnp.maximum(f, 0.0) @ w_hid[l] + b_hid[l]
    f = jnp.maximum(f, 0.0) @ w_out + b_out
    return x + h * f


if __name__ == "__main__":
    B = 300                                 # pads to 384 -> grid=(3,) at tb=128
    input_size, num_param, hidden_size, num_hidden_layers = 2, 1, 20, 2
    h = 0.5

    key = jax.random.PRNGKey(0)
    k_x, k_p, k_w = jax.random.split(key, 3)
    x = jax.random.normal(k_x, (B, input_size), jnp.float32)
    p = jax.random.normal(k_p, (B, num_param), jnp.float32)
    params = init_params(k_w, input_size, num_param, hidden_size,
                         num_hidden_layers)

    out = euler_n_forward(x, p, params, h=h,
                          num_hidden_layers=num_hidden_layers, tb=128)
    out = jax.block_until_ready(out)

    ref = euler_n_reference(x, p, params, h=h,
                            num_hidden_layers=num_hidden_layers)
    assert out.shape == (B, input_size)
    assert out.dtype == x.dtype
    assert jnp.allclose(out, ref, atol=1e-5, rtol=1e-5)

    print("KERNEL_OK")
</pallas_src>

<mosaic_0001>
module attributes {stable_mosaic.version = 11 : i64} {
  func.func @_euler_kernel(%arg0: i32, %arg1: memref<1xf32, #tpu.memory_space<smem>>, %arg2: memref<3x128xf32, #tpu.memory_space<vmem>>, %arg3: memref<20x3xf32, #tpu.memory_space<vmem>>, %arg4: memref<20x1xf32, #tpu.memory_space<vmem>>, %arg5: memref<1x20x20xf32, #tpu.memory_space<vmem>>, %arg6: memref<1x20x1xf32, #tpu.memory_space<vmem>>, %arg7: memref<2x20xf32, #tpu.memory_space<vmem>>, %arg8: memref<2x1xf32, #tpu.memory_space<vmem>>, %arg9: memref<2x128xf32, #tpu.memory_space<vmem>>) attributes {dimension_semantics = [#tpu.dimension_semantics<parallel>], iteration_bounds = array<i64: 3>, scalar_prefetch = 0 : i64, scratch_operands = 0 : i64, tpu.core_type = #tpu.core_type<tc>, window_params = [{transform_indices = @transform_0, window_bounds = array<i64: 1>}, {transform_indices = @transform_1, window_bounds = array<i64: 3, 128>}, {pipeline_mode = #tpu.pipeline_mode<synchronous>, transform_indices = @transform_2, window_bounds = array<i64: 20, 3>}, {pipeline_mode = #tpu.pipeline_mode<synchronous>, transform_indices = @transform_3, window_bounds = array<i64: 20, 1>}, {pipeline_mode = #tpu.pipeline_mode<synchronous>, transform_indices = @transform_4, window_bounds = array<i64: 1, 20, 20>}, {pipeline_mode = #tpu.pipeline_mode<synchronous>, transform_indices = @transform_5, window_bounds = array<i64: 1, 20, 1>}, {pipeline_mode = #tpu.pipeline_mode<synchronous>, transform_indices = @transform_6, window_bounds = array<i64: 2, 20>}, {pipeline_mode = #tpu.pipeline_mode<synchronous>, transform_indices = @transform_7, window_bounds = array<i64: 2, 1>}, {transform_indices = @transform_8, window_bounds = array<i64: 2, 128>}]} {
    %c0 = arith.constant 0 : index
    %0 = memref.load %arg1[%c0] : memref<1xf32, #tpu.memory_space<smem>>
    %c0_0 = arith.constant 0 : index
    %c0_1 = arith.constant 0 : index
    %1 = vector.load %arg2[%c0_0, %c0_1] : memref<3x128xf32, #tpu.memory_space<vmem>>, vector<3x128xf32>
    %c0_2 = arith.constant 0 : index
    %c0_3 = arith.constant 0 : index
    %2 = vector.load %arg3[%c0_2, %c0_3] : memref<20x3xf32, #tpu.memory_space<vmem>>, vector<20x3xf32>
    %3 = vector.extract_strided_slice %2 {offsets = [0, 0], sizes = [20, 1], strides = [1, 1]} : vector<20x3xf32> to vector<20x1xf32>
    %4 = vector.extract_strided_slice %1 {offsets = [0, 0], sizes = [1, 128], strides = [1, 1]} : vector<3x128xf32> to vector<1x128xf32>
    %5 = vector.broadcast %3 : vector<20x1xf32> to vector<20x128xf32>
    %6 = vector.broadcast %4 : vector<1x128xf32> to vector<20x128xf32>
    %7 = arith.mulf %5, %6 : vector<20x128xf32>
    %8 = vector.extract_strided_slice %2 {offsets = [0, 1], sizes = [20, 1], strides = [1, 1]} : vector<20x3xf32> to vector<20x1xf32>
    %9 = vector.extract_strided_slice %1 {offsets = [1, 0], sizes = [1, 128], strides = [1, 1]} : vector<3x128xf32> to vector<1x128xf32>
    %10 = vector.broadcast %8 : vector<20x1xf32> to vector<20x128xf32>
    %11 = vector.broadcast %9 : vector<1x128xf32> to vector<20x128xf32>
    %12 = arith.mulf %10, %11 : vector<20x128xf32>
    %13 = arith.addf %7, %12 : vector<20x128xf32>
    %14 = vector.extract_strided_slice %2 {offsets = [0, 2], sizes = [20, 1], strides = [1, 1]} : vector<20x3xf32> to vector<20x1xf32>
    %15 = vector.extract_strided_slice %1 {offsets = [2, 0], sizes = [1, 128], strides = [1, 1]} : vector<3x128xf32> to vector<1x128xf32>
    %16 = vector.broadcast %14 : vector<20x1xf32> to vector<20x128xf32>
    %17 = vector.broadcast %15 : vector<1x128xf32> to vector<20x128xf32>
    %18 = arith.mulf %16, %17 : vector<20x128xf32>
    %19 = arith.addf %13, %18 : vector<20x128xf32>
    %c0_4 = arith.constant 0 : index
    %c0_5 = arith.constant 0 : index
    %20 = vector.load %arg4[%c0_4, %c0_5] : memref<20x1xf32, #tpu.memory_space<vmem>>, vector<20x1xf32>
    %21 = vector.broadcast %20 : vector<20x1xf32> to vector<20x128xf32>
    %22 = arith.addf %19, %21 : vector<20x128xf32>
    %c0_6 = arith.constant 0 : index
    %c0_7 = arith.constant 0 : index
    %c0_8 = arith.constant 0 : index
    %23 = vector.load %arg5[%c0_6, %c0_7, %c0_8] : memref<1x20x20xf32, #tpu.memory_space<vmem>>, vector<1x20x20xf32>
    %24 = vector.shape_cast %23 : vector<1x20x20xf32> to vector<20x20xf32>
    %cst = arith.constant 0.000000e+00 : f32
    %25 = vector.broadcast %cst : f32 to vector<20x128xf32>
    %26 = arith.maximumf %22, %25 : vector<20x128xf32>
    %cst_9 = arith.constant dense<0.000000e+00> : vector<20x128xf32>
    %27 = tpu.matmul %24, %26, %cst_9 {dimension_numbers = #tpu.dot_dimension_numbers<[1], [0], [0], [1], [0, 0, 1, 1], [], []>} : vector<20x20xf32>, vector<20x128xf32>, vector<20x128xf32> -> vector<20x128xf32>
    %c0_10 = arith.constant 0 : index
    %c0_11 = arith.constant 0 : index
    %c0_12 = arith.constant 0 : index
    %28 = vector.load %arg6[%c0_10, %c0_11, %c0_12] : memref<1x20x1xf32, #tpu.memory_space<vmem>>, vector<1x20x1xf32>
    %29 = vector.shape_cast %28 : vector<1x20x1xf32> to vector<20x1xf32>
    %30 = vector.broadcast %29 : vector<20x1xf32> to vector<20x128xf32>
    %31 = arith.addf %27, %30 : vector<20x128xf32>
    %c0_13 = arith.constant 0 : index
    %c0_14 = arith.constant 0 : index
    %32 = vector.load %arg7[%c0_13, %c0_14] : memref<2x20xf32, #tpu.memory_space<vmem>>, vector<2x20xf32>
    %cst_15 = arith.constant 0.000000e+00 : f32
    %33 = vector.broadcast %cst_15 : f32 to vector<20x128xf32>
    %34 = arith.maximumf %31, %33 : vector<20x128xf32>
    %cst_16 = arith.constant dense<0.000000e+00> : vector<2x128xf32>
    %35 = tpu.matmul %32, %34, %cst_16 {dimension_numbers = #tpu.dot_dimension_numbers<[1], [0], [0], [1], [0, 0, 1, 1], [], []>} : vector<2x20xf32>, vector<20x128xf32>, vector<2x128xf32> -> vector<2x128xf32>
    %c0_17 = arith.constant 0 : index
    %c0_18 = arith.constant 0 : index
    %36 = vector.load %arg8[%c0_17, %c0_18] : memref<2x1xf32, #tpu.memory_space<vmem>>, vector<2x1xf32>
    %37 = vector.broadcast %36 : vector<2x1xf32> to vector<2x128xf32>
    %38 = arith.addf %35, %37 : vector<2x128xf32>
    %c0_19 = arith.constant 0 : index
    %c0_20 = arith.constant 0 : index
    %39 = vector.load %arg2[%c0_19, %c0_20] : memref<3x128xf32, #tpu.memory_space<vmem>>, vector<2x128xf32>
    %40 = vector.broadcast %0 : f32 to vector<2x128xf32>
    %41 = arith.mulf %40, %38 : vector<2x128xf32>
    %42 = arith.addf %39, %41 : vector<2x128xf32>
    %c0_21 = arith.constant 0 : index
    %c0_22 = arith.constant 0 : index
    %43 = vector.load %arg9[%c0_21, %c0_22] : memref<2x128xf32, #tpu.memory_space<vmem>>, vector<2x128xf32>
    tpu.vector_store %arg9[%c0_21, %c0_22], %42 {strides = array<i32>} : memref<2x128xf32, #tpu.memory_space<vmem>>, vector<2x128xf32>,
    return
  }
  func.func @transform_0(%arg0: i32) -> i32 {
    %c0_i32 = arith.constant 0 : i32
    %c0_i32_0 = arith.constant 0 : i32
    return %c0_i32 : i32
  }
  func.func @transform_1(%arg0: i32) -> (i32, i32) {
    %c0_i32 = arith.constant 0 : i32
    %c0_i32_0 = arith.constant 0 : i32
    return %c0_i32, %arg0 : i32, i32
  }
  func.func @transform_2(%arg0: i32) -> (i32, i32) {
    %c0_i32 = arith.constant 0 : i32
    %c0_i32_0 = arith.constant 0 : i32
    %c0_i32_1 = arith.constant 0 : i32
    return %c0_i32, %c0_i32_0 : i32, i32
  }
  func.func @transform_3(%arg0: i32) -> (i32, i32) {
    %c0_i32 = arith.constant 0 : i32
    %c0_i32_0 = arith.constant 0 : i32
    %c0_i32_1 = arith.constant 0 : i32
    return %c0_i32, %c0_i32_0 : i32, i32
  }
  func.func @transform_4(%arg0: i32) -> (i32, i32, i32) {
    %c0_i32 = arith.constant 0 : i32
    %c0_i32_0 = arith.constant 0 : i32
    %c0_i32_1 = arith.constant 0 : i32
    %c0_i32_2 = arith.constant 0 : i32
    return %c0_i32, %c0_i32_0, %c0_i32_1 : i32, i32, i32
  }
  func.func @transform_5(%arg0: i32) -> (i32, i32, i32) {
    %c0_i32 = arith.constant 0 : i32
    %c0_i32_0 = arith.constant 0 : i32
    %c0_i32_1 = arith.constant 0 : i32
    %c0_i32_2 = arith.constant 0 : i32
    return %c0_i32, %c0_i32_0, %c0_i32_1 : i32, i32, i32
  }
  func.func @transform_6(%arg0: i32) -> (i32, i32) {
    %c0_i32 = arith.constant 0 : i32
    %c0_i32_0 = arith.constant 0 : i32
    %c0_i32_1 = arith.constant 0 : i32
    return %c0_i32, %c0_i32_0 : i32, i32
  }
  func.func @transform_7(%arg0: i32) -> (i32, i32) {
    %c0_i32 = arith.constant 0 : i32
    %c0_i32_0 = arith.constant 0 : i32
    %c0_i32_1 = arith.constant 0 : i32
    return %c0_i32, %c0_i32_0 : i32, i32
  }
  func.func @transform_8(%arg0: i32) -> (i32, i32) {
    %c0_i32 = arith.constant 0 : i32
    %c0_i32_0 = arith.constant 0 : i32
    return %c0_i32, %arg0 : i32, i32
  }
}

</mosaic_0001>

<bundles_post_ra>
// kernel: tpu_custom_call.1
= control target key start
LH: loop header
LB: loop body
LE: loop exit
PB: predicated region body
PF: predicated region fallthrough
CT: control target
= control target key end

     0   :  { %s1066_s0 = inlined_call_operand.<no memory space> [shape: f32[1], index: 0, kind: input, shape index: {}]   ;;  %s1067_s1 = inlined_call_operand.vmem [shape: f32[3,384], index: 1, kind: input, shape index: {}]   ;;  %s1068_s2 = inlined_call_operand.vmem [shape: f32[20,3], index: 2, kind: input, shape index: {}]   ;;  %s1069_s3 = inlined_call_operand.vmem [shape: f32[20,1], index: 3, kind: input, shape index: {}]   ;;  %s1070_s4 = inlined_call_operand.vmem [shape: f32[1,20,20], index: 4, kind: input, shape index: {}]   ;;  %s1071_s5 = inlined_call_operand.vmem [shape: f32[1,20,1], index: 5, kind: input, shape index: {}]   ;;  %s1072_s6 = inlined_call_operand.vmem [shape: f32[2,20], index: 6, kind: input, shape index: {}]   ;;  %s1073_s7 = inlined_call_operand.vmem [shape: f32[2,1], index: 7, kind: input, shape index: {}]   ;;  %s1074_s8 = inlined_call_operand.hbm [shape: f32[2,384], index: 8, kind: output, shape index: {}]  }
   0x1   :  { %13 = sst [smem:[#allocation2]] %s1066_s0 }
   0x2   :  { %14 = vsyncpa [#allocation4], 0 }
   0x3   :  { %16 = vsyncpa [#allocation4 + $0x1], 0  ;;  %s904_s29 = smov 0   ;;  %s906_s30 = smov 0  }
   0x4   :  { %s908_s9 = smov 0   ;;  %s910_s10 = smov 0  }
   0x5 LB: > { %s925_s0 = sadd.s32 4294967295, %s847_s10   ;;  %s676_s11 = sadd.s32 4294967294, %s847_s10   ;;  %s847_s10 = sphi %s910_s10, %s1080_s10   ;;  %s843_s9 = sphi %s908_s9, %s1079_s9   ;;  %s839_s30 = sphi %s906_s30, %s1078_s30   ;;  %s835_s29 = sphi %s904_s29, %s1077_s29  }
   0x6   : > { %s929_s12 = sadd.s32 1, %s847_s10   ;;  %s202_s13 = sadd.s32 1, %s843_s9 }
   0x7   : > { %s199_s14 = ssub.s32 %s847_s10, %s929_s12  ;;  %p212_p0 = scmp.ne.s32.totalorder %s843_s9, %s839_s30 }
   0x8   : > { %p200_p1 = scmp.eq.s32.totalorder %s199_s14, 0  ;;  %p213_p2 = scmp.eq.s32.totalorder %s925_s0, 2 }
   0x9   : > { %p218_p3 = scmp.ne.s32.totalorder %s839_s30, %s835_s29  ;;  %p219_p4 = scmp.eq.s32.totalorder %s676_s11, 2 }
   0xa   : > { %s940_s15 = scalar_select %p200_p1, %s843_s9, %s202_s13  }
   0xb   : > { %p942_p5 = por %p213_p2, %p212_p0  ;;  %p946_p6 = por %p219_p4, %p218_p3 }
   0xc   : > { %p679_p7 = scmp.ge.s32.totalorder %s847_s10, 1  ;;  %p265_p8 = scmp.lt.s32.totalorder %s847_s10, 4 }
   0xe   : > { %p266_p9 = pnand %p679_p7, %p265_p8 }
   0xf   : > { %v304_v0 = vld [vmem:[%s1068_s2] sm:$0xff] (!%p266_p9)  ;;  %v849_v1 = vmov (!%p266_p9), 1   ;;  %v850_v2 = vmov (!%p266_p9), 0   ;;  %v305_v3 = vld [vmem:[%s1068_s2 + $0x8] sm:$0xff] (!%p266_p9)  ;;  %v851_v4 = vmov (!%p266_p9), 2   ;;  %v852_v10 = vmov (!%p266_p9), 0.0|0.0  }
  0x10   : > { %269 = sbr.rel (%p266_p9) target bundleno = 637 (0x27d), region = 52  ;;  %778 = vset.pattern.permute.xlu1 (!%p266_p9), %v849_v1  ;;  %777 = vset.pattern.permute.xlu0 (!%p266_p9), %v850_v2  ;;  %v306_v5 = vld [vmem:[%s1068_s2 + $0x10] sm:$0xf] (!%p266_p9)  ;;  %v373_v6 = vld [vmem:[%s1069_s3] sm:$0xff] (!%p266_p9)  ;;  %v374_v7 = vld [vmem:[%s1069_s3 + $0x8] sm:$0xff] (!%p266_p9)  ;;  %vm853_vm0 = vmmov (!%p266_p9), 0   ;;  %v322_v15 = vlaneseq (!%p266_p9) }
  0x11   : > { %330 = vperm.xlu1 (!%p266_p9), %778, %v304_v0   ;;  %309 = vperm.xlu0 (!%p266_p9), %777, %v304_v0   ;;  %v375_v8 = vld [vmem:[%s1069_s3 + $0x10] sm:$0xf] (!%p266_p9)  ;;  %v400_v9 = vld [vmem:[%s1071_s5] sm:$0xff] (!%p266_p9)  ;;  %v854_v12 = vmov (!%p266_p9), 0.0   ;;  %v401_v14 = vld [vmem:[%s1071_s5 + $0x8] sm:$0xff] (!%p266_p9)  ;;  %p298_p10 = scmp.lt.s32.totalorder (!%p266_p9), %s925_s0, 2 }
  0x12   : > { %726 = vmatprep.subr.bf16.mxu0 (!%p266_p9), %v852_v10  ;;  %729 = vmatprep.subr.bf16.mxu1 (!%p266_p9), %v852_v10  ;;  %v402_v11 = vld [vmem:[%s1071_s5 + $0x10] sm:$0xf] (!%p266_p9)  ;;  %v516_v13 = vld [vmem:[%s1073_s7] sm:$0x3] (!%p266_p9)  ;;  %v323_v18 = vshrl.u32 (!%p266_p9), %v322_v15, 7  ;;  %vm428_vm1 = vcmask (!%p266_p9), 1043456  }
  0x13   : > { %708 = vmatprep.mubr.msk.f32.mxu0 (!%p266_p9), %vm853_vm0, %v854_v12  ;;  %723 = vmatprep.mubr.msk.f32.mxu1 (!%p266_p9), %vm853_vm0, %v854_v12  ;;  %v394_v58 = vld [vmem:[%s1070_s4] sm:$0xff] (!%p266_p9)  ;;  %vm418_vm2 = vcmask (!%p266_p9), 162816   ;;  %v395_v59 = vld [vmem:[%s1070_s4 + $0x8] sm:$0xff] (!%p266_p9)  ;;  %v396_v60 = vld [vmem:[%s1070_s4 + $0x10] sm:$0xf] (!%p266_p9)  ;;  %s302_s23 = sld [smem:[#allocation2]] (!%p266_p9) }
  0x14   : > { %v343_v21 = vsub.s32 (!%p266_p9), 1, %v323_v18  ;;  %v324_v22 = vsub.s32 (!%p266_p9), 0, %v323_v18  ;;  %v365_v24 = vsub.s32 (!%p266_p9), 2, %v323_v18  ;;  %s689_s26 = sshll.u32 (!%p266_p9), %s925_s0, 5 }
  0x15   : > { %334 = vperm.xlu1 (!%p266_p9), %778, %v305_v3   ;;  %314 = vperm.xlu0 (!%p266_p9), %777, %v305_v3   ;;  %s1024_s18 = scalar_lea.hbm (!%p266_p9), %s1074_s8, %s689_s26 }
  0x17   : > { %s299_s24 = scalar_select %p298_p10, %s925_s0, 2 }
  0x18   : > { %s855_s0 = smov [#allocation3]  }
  0x19   : > { %780 = vset.pattern.permute.xlu1 %v851_v4  ;;  %779 = vset.pattern.permute.xlu0 %v851_v4  ;;  %s681_s25 = sshll.u32 %s299_s24, 2  ;;  %s295_s24 = sand.u32 1, %s839_s30  }
  0x1a   : > { %356 = vperm.xlu1 %780, %v305_v3   ;;  %352 = vperm.xlu0 %779, %v304_v0   ;;  %s991_s28 = scalar_lea.vmem %s1067_s1, %s681_s25  ;;  %s680_s25 = sshll.u32 %s295_s24, 1 }
  0x1b   : > { %v303_v23 = vld [vmem:[%s991_s28] sm:$0x7]  ;;  %s297_s27 = scalar_lea.vmem [#allocation3], %s680_s25  ;;  %s604_s19 = scalar_lea.sflag [#allocation4], %s295_s24 }
  0x1c   : > { %v344_v25 = vrot.slane %v303_v23, %v343_v21  ;;  %v325_v26 = vrot.slane %v303_v23, %v324_v22  ;;  %v366_v29 = vrot.slane %v303_v23, %v365_v24  ;;  %s617_s11 = sshll.u32 %s297_s27, 4  ;;  %s1026_s11 = int_to_ptr.vmem [resolvable:$true] %s617_s11 }
  0x1d   : > { %s785_s20 = scalar_lea.vmem %s1026_s11, 32 }
  0x1e   : > { %781 = vset.pattern.permute.xlu1 %v850_v2  ;;  %782 = vset.pattern.permute.xlu0 %v849_v1  ;;  %p786_p11 = scmp.ne.s32.totalorder %s1026_s11, %s785_s20 }
  0x1f   : > { %319 = vperm.xlu1 %781, %v306_v5   ;;  %338 = vperm.xlu0 %782, %v306_v5  }
  0x20   : > { %p787_p12 = pnand %p786_p11, %p942_p5 }
  0x22   : > { %p788_p13 = pneg %p787_p12 }
  0x23   : > { %378 = vperm.xlu1 %781, %v373_v6   ;;  %783 = vset.pattern.permute.xlu0 %v851_v4 }
  0x24   : > { %360 = vperm.xlu0 %783, %v306_v5  }
  0x27   : > { %383 = vperm.xlu1 %781, %v374_v7  }
  0x28   : > { %784 = vset.pattern.permute.xlu0 %v850_v2 }
  0x29   : > { %410 = vperm.xlu0 %784, %v401_v14   ;;  %v512_v14 = vld [vmem:[%s1072_s6] sm:$0x3] }
  0x2b   : > { %388 = vperm.xlu1 %781, %v375_v8  }
  0x2f   : > { %405 = vperm.xlu1 %781, %v400_v9  }
  0x33   : > { %415 = vperm.xlu1 %781, %v402_v11  }
  0x37   : > { %519 = vperm.xlu1 %781, %v516_v13  }
  0x90   : > { %v331_v16 = vpop.permute.xlu1 %330  ;;  %v310_v17 = vpop.permute.xlu0 %309 }
  0x91   : > { %v345_v30 = vmul.f32 %v344_v25, %v331_v16  ;;  %v326_v31 = vmul.f32 %v325_v26, %v310_v17  ;;  %v599_v17 = vstv %s302_s23 }
  0x93   : > { %v348_v37 = vadd.f32 %v345_v30, %v326_v31 }
  0x94   : > { %v335_v19 = vpop.permute.xlu1 %334  ;;  %v315_v20 = vpop.permute.xlu0 %314 }
  0x95   : > { %v346_v34 = vmul.f32 %v344_v25, %v335_v19  ;;  %v327_v35 = vmul.f32 %v325_v26, %v315_v20  ;;  %v598_v20 = vld [vmem:[%s991_s28] sm:$0x3]  ;;  %s789_s28 = sshll.u32 %s855_s0, 4  ;;  %s790_s28 = int_to_ptr.vmem [resolvable:$false] %s789_s28 }
  0x96   : > { %s791_s21 = scalar_lea.vmem %s790_s28, 64  ;;  %p792_p0 = scmp.lt.s32.totalorder %s1026_s11, %s790_s28 }
  0x97   : > { %v349_v40 = vadd.f32 %v346_v34, %v327_v35  ;;  %p793_p1 = scmp.lt.s32.totalorder %s791_s21, %s785_s20 }
  0x99   : > { %v357_v27 = vpop.permute.xlu1 %356  ;;  %v353_v28 = vpop.permute.xlu0 %352  ;;  %p794_p2 = por %p793_p1, %p792_p0 }
  0x9a   : > { %v367_v36 = vmul.f32 %v366_v29, %v353_v28  ;;  %v368_v38 = vmul.f32 %v366_v29, %v357_v27 }
  0x9b   : > { %p795_p3 = pnand %p794_p2, %p788_p13 }
  0x9c   : > { %v370_v43 = vadd.f32 %v367_v36, %v348_v37  ;;  %v371_v47 = vadd.f32 %v368_v38, %v349_v40 }
  0x9e   : > { %v320_v32 = vpop.permute.xlu1 %319  ;;  %v339_v33 = vpop.permute.xlu0 %338 }
  0x9f   : > { %v328_v41 = vmul.f32 %v325_v26, %v320_v32  ;;  %v347_v42 = vmul.f32 %v344_v25, %v339_v33 }
  0xa1   : > { %v350_v49 = vadd.f32 %v347_v42, %v328_v41 }
  0xa2   : > { %v379_v39 = vpop.permute.xlu1 %378 }
  0xa3   : > { %v361_v44 = vpop.permute.xlu0 %360  ;;  %v391_v45 = vadd.f32 %v379_v39, %v370_v43 }
  0xa4   : > { %v369_v46 = vmul.f32 %v366_v29, %v361_v44 }
  0xa5   : > { %v397_v51 = vmax.f32 %v391_v45, 0.0 }
  0xa6   : > { %v384_v48 = vpop.permute.xlu1 %383  ;;  %v372_v53 = vadd.f32 %v369_v46, %v350_v49 }
  0xa7   : > { %v392_v50 = vadd.f32 %v384_v48, %v371_v47 }
  0xa8   : > { %v411_v0 = vpop.permute.xlu0 %410 }
  0xa9   : > { %v398_v52 = vmax.f32 %v392_v50, 0.0 }
  0xaa   : > { %v389_v54 = vpop.permute.xlu1 %388 }
  0xab   : > { %v393_v55 = vadd.f32 %v389_v54, %v372_v53  ;;  %v727_v56 = vpack.c.bf16 %v398_v52, %v397_v51 }
  0xad   : > { %728 = vmatpush3.bf16.msra.mxu0 %v727_v56  ;;  %v399_v57 = vmax.f32 %v393_v55, 0.0 }
  0xae   : > { %706 = vmatprep.subr.mxu0 %v854_v12  ;;  %v406_v63 = vpop.permute.xlu1 %405 }
  0xb1   : > { %707 = vmatpush3.msk.msra.mxu0 %vm428_vm1, %v399_v57 }
  0xb2   : > { %709 = vmatmul.mubr.msk.f32.vlgmr.msra.gmra.mrb[0].mxu0 %vm418_vm2, %v394_v58  ;;  %v416_v7 = vpop.permute.xlu1 %415 }
  0xb3   : > { %711 = vmatprep.mubr.msk.f32.mxu0 %vm853_vm0, %v854_v12 }
  0xb6   : > { %712 = vmatmul.mubr.msk.f32.gmra.mrb[2].mxu0 %vm418_vm2, %v395_v59  ;;  %v520_v15 = vpop.permute.xlu1 %519 }
  0xb7   : > { %714 = vmatprep.mubr.msk.f32.mxu0 %vm853_vm0, %v854_v12 }
  0xba   : > { %715 = vmatmul.mubr.msk.f32.gmra.mrb[4].mxu0 %vm418_vm2, %v396_v60 }
 0x185   : > { %v498_v61 = vpop.f32.mrb[0].mxu0 }
 0x186   : > { %v710_v62 = vpop.f32.mrb[1].mxu0  ;;  %v499_v1 = vadd.f32 %v498_v61, %v406_v63 }
 0x188   : > { %v513_v5 = vmax.f32 %v499_v1, 0.0 }
 0x189   : > { %v503_v2 = vpop.f32.mrb[2].mxu0 }
 0x18a   : > { %v504_v3 = vadd.f32 %v503_v2, %v411_v0  ;;  %v713_v4 = vpop.f32.mrb[3].mxu0 }
 0x18c   : > { %v514_v6 = vmax.f32 %v504_v3, 0.0 }
 0x18d   : > { %v508_v8 = vpop.f32.mrb[4].mxu0 }
 0x18e   : > { %v509_v9 = vadd.f32 %v508_v8, %v416_v7  ;;  %v716_v10 = vpop.f32.mrb[5].mxu0  ;;  %v730_v11 = vpack.c.bf16 %v514_v6, %v513_v5 }
 0x190   : > { %731 = vmatpush3.bf16.msra.mxu1 %v730_v11  ;;  %v515_v13 = vmax.f32 %v509_v9, 0.0 }
 0x191   : > { %721 = vmatprep.subr.mxu1 %v854_v12 }
 0x194   : > { %722 = vmatpush3.msk.msra.mxu1 %vm428_vm1, %v515_v13 }
 0x195   : > { %724 = vmatmul.mubr.msk.f32.vlgmr.msra.gmra.mrb[0].mxu1 %vm418_vm2, %v512_v14 }
 0x268   : > { %v594_v16 = vpop.f32.mrb[0].mxu1 }
 0x269   : > { %v595_v18 = vadd.f32 %v594_v16, %v520_v15  ;;  %v725_v19 = vpop.f32.mrb[1].mxu1 }
 0x26b   : > { %v600_v12 = vmul.f32 %v599_v17, %v595_v18 }
 0x26d   : > { %v601_v21 = vadd.f32 %v600_v12, %v598_v20 }
 0x26f   : > { %602 = vst [vmem:[%s297_s27] sm:$0x3] %v601_v21 }
 0x270   : > { %798 = shalt.err (!%p795_p3)
}
 0x271   : > { %s799_s22 = scalar_lea.hbm %s1024_s18, 32  ;;  %s803_s25 = scalar_lea.hbm %s1074_s8, 96 }
 0x272   : > { %p800_p4 = scmp.ne.s32.totalorder %s1024_s18, %s799_s22  ;;  %p804_p9 = scmp.lt.u32.totalorder %s1024_s18, %s1074_s8 }
 0x273   : > { %p805_p10 = scmp.lt.u32.totalorder %s803_s25, %s799_s22  ;;  %p807_p12 = scmp.lt.u32.totalorder %s799_s22, %s1024_s18 }
 0x274   : > { %p801_p7 = pnand %p800_p4, %p942_p5 }
 0x275   : > { %p806_p11 = por %p805_p10, %p804_p9 }
 0x276   : > { %p802_p8 = pneg %p801_p7 }
 0x277   : > { %p808_p13 = por %p807_p12, %p806_p11 }
 0x279   : > { %p809_p0 = pnand %p808_p13, %p802_p8 }
 0x27b   : > { %812 = shalt.err (!%p809_p0)
}
 0x27c   : > { %732 = dma.vmem_to_hbm [thread:$0]  (%p942_p5), %s1026_s11, 32, %s1024_s18, %s604_s19  }
 0x27d PF: > { %p738_p1 = scmp.ge.s32.totalorder %s847_s10, 2  ;;  %s629_s13 = sand.u32 1, %s835_s29  }
 0x27e   : > { %s630_s14 = scalar_lea.sflag [#allocation4], %s629_s13 }
 0x27f   : > { %p735_p2 = pnand %p738_p1, %p946_p6 }
 0x281   : > { %830 = dma.done.wait (!%p735_p2), %s630_s14, 32  }
 0x282   : > { %832 = vsyncadd (!%p735_p2), %s630_s14, 4294967264  ;;  %p19_p3 = scmp.ge.s32.totalorder %s929_s12, 5   ;;  %s1077_s29 = smov %s839_s30 }
 0x283   : > { %s1078_s30 = smov %s843_s9  ;;  %s1079_s9 = smov %s940_s15 }
 0x284   : > { %s1080_s10 = smov %s929_s12  ;;  %21 = sbr.rel (!%p19_p3) target bundleno = 5 (0x5), region = 87 }
 0x28b   :  { %635 = vsyncpa [#allocation4], 1 }
 0x28c   :  { %637 = vsyncpa [#allocation4 + $0x1], 1 }

</bundles_post_ra>
